<compile_context>
chip_gen: v7x
topology: tpu7x:2x2x1
jax: 0.10.0
libtpu: 0.0.40
codegen_flags: <defaults>
</compile_context>

<pallas_src>
import functools

import jax
import jax.numpy as jnp
from jax.experimental import pallas as pl
from jax.experimental.pallas import tpu as pltpu


_INSTANCE_NORM_EPS = 1e-5  # PyTorch InstanceNorm1d default


# -----------------------------------------------------------------------------
# pltpu.roll direction probe (tiny one-off kernel, lru-cached)
# -----------------------------------------------------------------------------
def _roll_probe_kernel(x_ref, o_ref):
    o_ref[...] = pltpu.roll(x_ref[...], shift=1, axis=1)


@functools.lru_cache(maxsize=1)
def _roll_sign():
    """+1 if pltpu.roll matches jnp.roll (out[i] = in[(i - shift) % n]), else -1.

    One (8,128) device kernel, run once per process (lru_cache), outside the
    hot path.  Kept on-device (not interpret mode) so the answer is guaranteed
    to match the real Mosaic lowering; once verified for a given jaxlib the
    constant can be pinned and this probe deleted.
    """
    x = jnp.broadcast_to(jnp.arange(128, dtype=jnp.float32), (8, 128))
    y = pl.pallas_call(
        _roll_probe_kernel,
        out_shape=jax.ShapeDtypeStruct((8, 128), jnp.float32),
    )(x)
    return 1 if abs(float(y[0, 1])) < 0.5 else -1


# -----------------------------------------------------------------------------
# One ResBlock on a sample-major (rows, L) slab (batched, no per-sample loop)
# -----------------------------------------------------------------------------
def _resblock_on_slab(x, gamma_ref, beta_ref, w_pw_ref, w_tap_ref, w_res_ref,
                      mask_ref, kmax, roll_sign, eps):
    """DynamicDepthSeparableConv1dResBlock on a (rows_in, L) slab.

    Rows are sample-major (row = sample*C_in + channel, L on lanes):
      * InstanceNorm / affine / ReLU: batched per-row ops over the whole slab.
      * pointwise Conv1d (k=1): one block-diagonal MXU matmul.
      * gated depthwise convs: folded centered taps; per tap one pltpu.roll
        (XLU), one column-broadcast mul, one boundary-mask mul, one add.
      * residual: identity or one block-diagonal MXU matmul.
    """
    L = x.shape[-1]

    # InstanceNorm1d (biased variance, eps inside sqrt) + affine, then ReLU.
    mean = jnp.mean(x, axis=-1, keepdims=True)
    xc = x - mean
    var = jnp.mean(xc * xc, axis=-1, keepdims=True)
    h = xc * jax.lax.rsqrt(var + eps)
    h = h * gamma_ref[...] + beta_ref[...]
    h = jnp.maximum(h, 0.0)

    # Pointwise Conv1d (kernel_size=1, bias=False): ONE matmul for all samples.
    p = jnp.dot(w_pw_ref[...], h, preferred_element_type=jnp.float32)

    # Folded gated depthwise taps:
    #   acc[:, t] += w_tap[j] * p[:, t + (j - pmax)]   (zero outside [0, L))
    pmax = (kmax - 1) // 2
    acc = w_tap_ref[pmax] * p                      # center tap: no mask needed
    for j in range(kmax):
        d = j - pmax
        if d == 0 or abs(d) >= L:
            continue
        rolled = pltpu.roll(p, shift=(roll_sign * (-d)) % L, axis=1)
        acc = acc + (w_tap_ref[j] * rolled) * mask_ref[j]

    # Residual branch: identity or 1x1 conv (block-diagonal matmul).
    if w_res_ref is not None:
        res = jnp.dot(w_res_ref[...], x, preferred_element_type=jnp.float32)
    else:
        res = x
    return acc + res


# -----------------------------------------------------------------------------
# Fully fused TimeSeriesExtractor kernel (one original batch sample per step)
# -----------------------------------------------------------------------------
def _tse_fused_kernel(has_res_flags, kmax, eps, roll_sign, *refs):
    """refs = (x_ref, mask_ref, [gamma, beta, w_pw, w_tap(, w_res)]*, out_ref).

    The PyTorch `.view()` reshapes between generator and aggregator are pure
    row relabelings of the sample-major slab, so the 4 ResBlocks chain with
    zero data movement and every intermediate stays in VMEM/vregs.
    """
    x_ref, mask_ref = refs[0], refs[1]
    out_ref = refs[-1]
    prefs = refs[2:-1]

    h = x_ref[0].astype(jnp.float32)               # (data_height, L) slab
    idx = 0
    for has_res in has_res_flags:
        gamma_ref, beta_ref, w_pw_ref, w_tap_ref = prefs[idx:idx + 4]
        idx += 4
        w_res_ref = None
        if has_res:
            w_res_ref = prefs[idx]
            idx += 1
        h = _resblock_on_slab(h, gamma_ref, beta_ref, w_pw_ref, w_tap_ref,
                              w_res_ref, mask_ref, kmax, roll_sign, eps)
    out_ref[0] = h.astype(out_ref.dtype)           # (num_ts, L) lane-dense store


# -----------------------------------------------------------------------------
# Trace-time parameter preparation (tiny jnp ops, constant-folded under jit)
# -----------------------------------------------------------------------------
def _fold_taps(prm, kernel_sizes, kmax):
    """softmax(gate)-weighted sum of all depthwise kernels -> (kmax, C_out)."""
    c_out = prm["w_pw"].shape[0]
    pmax = (kmax - 1) // 2
    gates = jax.nn.softmax(prm["gate"].astype(jnp.float32))
    w_tap = jnp.zeros((kmax, c_out), jnp.float32)
    for idx, k in enumerate(kernel_sizes):
        pad = (k - 1) // 2
        w_tap = w_tap.at[pmax - pad:pmax - pad + k, :].add(
            gates[idx] * prm["w_dw"][idx].astype(jnp.float32).T)
    return w_tap


def _prepare_block(prm, n_samp, kernel_sizes, kmax):
    """Tile / block-diagonalize one ResBlock's params for the (rows, L) slab."""
    c_out, c_in = prm["w_pw"].shape
    eye = jnp.eye(n_samp, dtype=jnp.float32)
    w_tap = _fold_taps(prm, kernel_sizes, kmax)                   # (kmax, c_out)
    return {
        "gamma": jnp.tile(prm["gamma"].astype(jnp.float32), n_samp)[:, None],
        "beta": jnp.tile(prm["beta"].astype(jnp.float32), n_samp)[:, None],
        "w_pw": jnp.kron(eye, prm["w_pw"].astype(jnp.float32)),
        "w_tap": jnp.tile(w_tap, (1, n_samp))[:, :, None],        # (kmax, rows_out, 1)
        "w_res": (None if prm["w_res"] is None
                  else jnp.kron(eye, prm["w_res"].astype(jnp.float32))),
        "rows_in": n_samp * c_in,
        "rows_out": n_samp * c_out,
    }


def _boundary_masks(kmax, L):
    """(kmax, 1, L) f32: mask[j] = 1 where tap displacement (j - pmax) is valid."""
    pmax = (kmax - 1) // 2
    col = jnp.arange(L)
    rows = []
    for j in range(kmax):
        d = j - pmax
        if d == 0:
            m = jnp.ones((L,), jnp.float32)
        elif d > 0:
            m = (col < (L - d)).astype(jnp.float32)
        else:
            m = (col >= (-d)).astype(jnp.float32)
        rows.append(m)
    return jnp.stack(rows)[:, None, :]


def _const_map(ndim):
    return lambda i: (0,) * ndim


# -----------------------------------------------------------------------------
# TimeSeriesExtractor forward (Pallas, fully fused) and pure-JAX reference
# -----------------------------------------------------------------------------
def time_series_extractor_forward(x, params, cfg, *, roll_sign=1):
    """Matches TimeSeriesExtractor.forward (normalize=False -> Identity)."""
    # TODO(synk): DAIN_Layer (normalize=True path) is not implemented; the
    # module default normalize=False uses nn.Identity(), which is what we fuse.
    b, c, L = x.shape
    dh, ew, aw = cfg["data_height"], cfg["extraction_win"], cfg["aggregation_win"]
    num_ts, ks = cfg["num_ts"], cfg["kernel_sizes"]
    assert all(k % 2 == 1 for k in ks), "odd kernel sizes (same-pad)"
    kmax = max(ks)
    ng = dh // ew

    blocks = []
    if ew > 1:                                     # time_series_generator
        for prm in params["generator"]:
            blocks.append((_prepare_block(prm, ng, ks, kmax),
                           prm["w_res"] is not None))
    for prm in params["aggregator"]:               # time_series_aggregator
        blocks.append((_prepare_block(prm, aw, ks, kmax),
                       prm["w_res"] is not None))

    # The module's .view() glue is a pure row relabeling of the per-sample
    # slab; verify the row counts actually chain up.
    rows = dh
    for blk, _ in blocks:
        assert blk["rows_in"] == rows, (blk["rows_in"], rows)
        rows = blk["rows_out"]
    assert rows == num_ts, (rows, num_ts)          # requires num_ts == aggregation_win

    mask = _boundary_masks(kmax, L)
    x_dh = x[:, :dh, :]                            # channels actually processed

    args = [x_dh, mask]
    in_specs = [
        pl.BlockSpec((1, dh, L), lambda i: (i, 0, 0)),
        pl.BlockSpec(mask.shape, _const_map(mask.ndim)),
    ]
    has_res_flags = []
    for blk, has_res in blocks:
        has_res_flags.append(has_res)
        names = ["gamma", "beta", "w_pw", "w_tap"] + (["w_res"] if has_res else [])
        for name in names:
            a = blk[name]
            args.append(a)
            # Whole-array blocks with constant index_maps: fetched once,
            # VMEM-resident across the whole grid.
            in_specs.append(pl.BlockSpec(a.shape, _const_map(a.ndim)))

    kernel = functools.partial(_tse_fused_kernel, tuple(has_res_flags), kmax,
                               _INSTANCE_NORM_EPS, roll_sign)

    out = pl.pallas_call(
        kernel,
        out_shape=jax.ShapeDtypeStruct((b, num_ts, L), x.dtype),
        grid_spec=pltpu.PrefetchScalarGridSpec(
            num_scalar_prefetch=0,
            grid=(b,),                             # one original batch sample/step
            in_specs=in_specs,
            out_specs=pl.BlockSpec((1, num_ts, L), lambda i: (i, 0, 0)),
        ),
        compiler_params=pltpu.CompilerParams(
            dimension_semantics=("parallel",)),    # shards across v7x TCs
    )(*args)

    if c > dh:
        out = jnp.concatenate([out, x[:, dh:, :]], axis=1)
    return out


def _resblock_ref(x, prm, kernel_sizes, eps=_INSTANCE_NORM_EPS):
    """Pure-JAX reference mirroring DynamicDepthSeparableConv1dResBlock."""
    mean = jnp.mean(x, axis=-1, keepdims=True)
    var = jnp.mean((x - mean) ** 2, axis=-1, keepdims=True)
    h = (x - mean) / jnp.sqrt(var + eps)
    h = h * prm["gamma"][None, :, None] + prm["beta"][None, :, None]
    h = jnp.maximum(h, 0.0)
    p = jnp.einsum("oc,ncl->nol", prm["w_pw"], h,
                   precision=jax.lax.Precision.HIGHEST)
    gates = jax.nn.softmax(prm["gate"])
    out = jnp.zeros_like(p)
    for idx, (wk, k) in enumerate(zip(prm["w_dw"], kernel_sizes)):
        pad = (k - 1) // 2
        conv = jax.lax.conv_general_dilated(
            p, wk[:, None, :], window_strides=(1,), padding=[(pad, pad)],
            dimension_numbers=("NCH", "OIH", "NCH"),
            feature_group_count=p.shape[1],
            precision=jax.lax.Precision.HIGHEST)
        out = out + gates[idx] * conv
    if prm["w_res"] is not None:
        res = jnp.einsum("oc,ncl->nol", prm["w_res"], x,
                         precision=jax.lax.Precision.HIGHEST)
    else:
        res = x
    return out + res


def time_series_extractor_ref(x, params, cfg):
    b, c, l = x.shape
    dh, ew, aw = cfg["data_height"], cfg["extraction_win"], cfg["aggregation_win"]
    num_ts, ks = cfg["num_ts"], cfg["kernel_sizes"]
    out = x[:, :dh, :].reshape(-1, ew, l)
    if ew > 1:
        for prm in params["generator"]:
            out = _resblock_ref(out, prm, ks)
    out = out.reshape(-1, dh // ew // aw, l)
    for prm in params["aggregator"]:
        out = _resblock_ref(out, prm, ks)
    out = out.reshape(b, num_ts, l)
    if c > dh:
        out = jnp.concatenate([out, x[:, dh:, :]], axis=1)
    return out


# -----------------------------------------------------------------------------
# Deterministic synthetic parameters + demo
# -----------------------------------------------------------------------------
def _init_resblock_params(key, c_in, c_out, kernel_sizes):
    nks = len(kernel_sizes)
    keys = jax.random.split(key, 5 + nks)

    def u(k, shape, fan_in):
        s = 1.0 / float(fan_in) ** 0.5
        return jax.random.uniform(k, shape, jnp.float32, -s, s)

    return {
        "gamma": 1.0 + 0.1 * jax.random.normal(keys[0], (c_in,), jnp.float32),
        "beta": 0.1 * jax.random.normal(keys[1], (c_in,), jnp.float32),
        "w_pw": u(keys[2], (c_out, c_in), c_in),
        "w_dw": [u(keys[3 + i], (c_out, k), k)
                 for i, k in enumerate(kernel_sizes)],
        "gate": jax.random.normal(keys[3 + nks], (nks,), jnp.float32),
        "w_res": (None if c_in == c_out
                  else u(keys[4 + nks], (c_out, c_in), c_in)),
    }


if __name__ == "__main__":
    # Small, self-consistent config (the module's reshapes require
    # num_ts == aggregation_win): data_height=16, extraction_win=4,
    # aggregation_win=2, num_ts=2, kernel_sizes=[3, 15], normalize=False.
    cfg = dict(data_height=16, extraction_win=4, aggregation_win=2, num_ts=2,
               kernel_sizes=(3, 15))
    b, extra_c, L = 2, 2, 128          # L multiple of 128 -> lane-dense tiles
    c = cfg["data_height"] + extra_c   # extra channels exercise the final cat

    key = jax.random.PRNGKey(0)
    kx, kg1, kg2, ka1, ka2 = jax.random.split(key, 5)
    x = jax.random.normal(kx, (b, c, L), dtype=jnp.float32)

    agg_in = cfg["data_height"] // cfg["extraction_win"] // cfg["aggregation_win"]
    params = {
        "generator": [
            _init_resblock_params(kg1, cfg["extraction_win"], 16, cfg["kernel_sizes"]),
            _init_resblock_params(kg2, 16, 1, cfg["kernel_sizes"]),
        ],
        "aggregator": [
            _init_resblock_params(ka1, agg_in, 16, cfg["kernel_sizes"]),
            _init_resblock_params(ka2, 16, 1, cfg["kernel_sizes"]),
        ],
    }

    roll_sign = _roll_sign()

    fwd = jax.jit(lambda xx: time_series_extractor_forward(
        xx, params, cfg, roll_sign=roll_sign))
    out = jax.block_until_ready(fwd(x))

    ref = time_series_extractor_ref(x, params, cfg)
    assert out.shape == (b, cfg["num_ts"] + extra_c, L), out.shape
    # Kernel (Mosaic MXU) and reference (XLA conv/einsum) use different f32
    # matmul paths; any structural/offset bug would produce O(1) errors, so
    # this tolerance remains a meaningful correctness check.
    err = float(jnp.max(jnp.abs(out - ref)))
    assert jnp.allclose(out, ref, atol=1e-2, rtol=1e-2), err

    print("KERNEL_OK")
</pallas_src>

<mosaic_0001>
module attributes {stable_mosaic.version = 11 : i64} {
  func.func @_roll_probe_kernel(%arg0: memref<8x128xf32, #tpu.memory_space<vmem>>, %arg1: memref<8x128xf32, #tpu.memory_space<vmem>>) attributes {dimension_semantics = [], scalar_prefetch = 0 : i64, scratch_operands = 0 : i64, tpu.core_type = #tpu.core_type<tc>} {
    %c0 = arith.constant 0 : index
    %c0_0 = arith.constant 0 : index
    %0 = vector.load %arg0[%c0, %c0_0] : memref<8x128xf32, #tpu.memory_space<vmem>>, vector<8x128xf32>
    %c1_i32 = arith.constant 1 : i32
    %1 = tpu.dynamic_rotate %0 by %c1_i32 dim 1 : vector<8x128xf32>, i32 -> vector<8x128xf32>
    %c0_1 = arith.constant 0 : index
    %c0_2 = arith.constant 0 : index
    %2 = vector.load %arg1[%c0_1, %c0_2] : memref<8x128xf32, #tpu.memory_space<vmem>>, vector<8x128xf32>
    tpu.vector_store %arg1[%c0_1, %c0_2], %1 {strides = array<i32>} : memref<8x128xf32, #tpu.memory_space<vmem>>, vector<8x128xf32>,
    return
  }
}

</mosaic_0001>

<bundles_post_ra>
// kernel: tpu_custom_call.1
= control target key start
LH: loop header
LB: loop body
LE: loop exit
PB: predicated region body
PF: predicated region fallthrough
CT: control target
= control target key end

     0   :  { %6 = vsyncpa [#allocation3], 0  ;;  %s128_s0 = inlined_call_operand.hbm [shape: f32[8,128], index: 0, kind: input, shape index: {}]   ;;  %s129_s1 = inlined_call_operand.hbm [shape: f32[8,128], index: 1, kind: output, shape index: {}]  }
   0x1   :  { %7 = vsyncpa [#allocation4], 0  ;;  %s91_s6 = smov [#allocation2]   ;;  %s43_s10 = scalar_lea.hbm %s128_s0, 128 }
   0x2   :  { %s14_s7 = sshll.u32 %s91_s6, 4  ;;  %p44_p0 = scmp.ne.s32.totalorder %s128_s0, %s43_s10  ;;  %s15_s7 = int_to_ptr.vmem [resolvable:$true] %s14_s7 }
   0x3   :  { %p47_p1 = scmp.lt.u32.totalorder %s43_s10, %s128_s0 }
   0x5   :  { %p49_p2 = pnand %p47_p1, %p44_p0 }
   0x7   :  { %52 = shalt.err (!%p49_p2)
}
   0x8   :  { %s53_s15 = scalar_lea.vmem %s15_s7, 128  ;;  %p58_p4 = scmp.lt.s32.totalorder %s15_s7, %s15_s7 }
   0x9   :  { %p54_p3 = scmp.ne.s32.totalorder %s15_s7, %s53_s15  ;;  %p59_p5 = scmp.lt.s32.totalorder %s53_s15, %s53_s15 }
   0xb   :  { %p60_p6 = por %p59_p5, %p58_p4 }
   0xd   :  { %p61_p7 = pnand %p60_p6, %p54_p3 }
   0xf   :  { %64 = shalt.err (!%p61_p7)
}
  0x10   :  { %17 = dma.hbm_to_vmem [thread:$0]  %s128_s0, 128, %s15_s7, [#allocation3]  }
  0x11   :  { %87 = dma.done.wait [#allocation3], 128  }
  0x12   :  { %88 = vsyncadd [#allocation3], 4294967168  ;;  %v21_v0 = vld [vmem:[#allocation2] sm:$0xff]  ;;  %s92_s18 = smov 1   ;;  %s93_s19 = smov [#allocation5]  }
  0x13   :  { %22 = vrot.lane.b32.xlu0 %v21_v0, %s92_s18  ;;  %s31_s20 = sshll.u32 %s93_s19, 4  ;;  %s32_s20 = int_to_ptr.vmem [resolvable:$true] %s31_s20 }
  0x14   :  { %s65_s21 = scalar_lea.vmem %s32_s20, 128  ;;  %p70_p9 = scmp.lt.s32.totalorder %s32_s20, %s32_s20 }
  0x15   :  { %p66_p8 = scmp.ne.s32.totalorder %s32_s20, %s65_s21  ;;  %p71_p10 = scmp.lt.s32.totalorder %s65_s21, %s65_s21 }
  0x17   :  { %p72_p11 = por %p71_p10, %p70_p9 }
  0x19   :  { %p73_p12 = pnand %p72_p11, %p66_p8 }
  0x85   :  { %v23_v1 = vpop.permute.xlu0 %22 }
  0x86   :  { %24 = vst [vmem:[#allocation5] sm:$0xff] %v23_v1 }
  0x87   :  { %76 = shalt.err (!%p73_p12)
}
  0x88   :  { %s77_s0 = scalar_lea.hbm %s129_s1, 128 }
  0x89   :  { %p78_p13 = scmp.ne.s32.totalorder %s129_s1, %s77_s0  ;;  %p81_p0 = scmp.lt.u32.totalorder %s77_s0, %s129_s1 }
  0x8b   :  { %p83_p1 = pnand %p81_p0, %p78_p13 }
  0x8d   :  { %86 = shalt.err (!%p83_p1)
}
  0x8e   :  { %34 = dma.vmem_to_hbm [thread:$0]  %s32_s20, 128, %s129_s1, [#allocation4]  }
  0x8f   :  { %89 = dma.done.wait [#allocation4], 128  }
  0x90   :  { %90 = vsyncadd [#allocation4], 4294967168 }
  0x91   :  { %38 = vsyncpa [#allocation3], 1 }
  0x92   :  { %39 = vsyncpa [#allocation4], 1 }

</bundles_post_ra>
